<compile_context>
chip_gen: v5e
topology: v5e:2x2
jax: 0.10.0
libtpu: 0.0.40
codegen_flags: <defaults>
</compile_context>

<pallas_src>
import functools

import jax
import jax.numpy as jnp
from jax.experimental import pallas as pl
from jax.experimental.pallas import tpu as pltpu


def _contrastive_loss_kernel(x0_ref, x1_ref, y_ref, out_ref, acc_ref, *,
                             margin, inv_scale, batch, block_b):
    i = pl.program_id(0)

    @pl.when(i == 0)
    def _init():
        acc_ref[0] = jnp.float32(0.0)

    # Load native dtype, upcast to f32 for the math (matches torch fp32 ref).
    x0 = x0_ref[...].astype(jnp.float32)
    x1 = x1_ref[...].astype(jnp.float32)
    y = y_ref[...].astype(jnp.float32)

    diff = x0 - x1                                            # (block_b, D)
    dist_sq = jnp.sum(diff * diff, axis=1, keepdims=True)     # (block_b, 1)
    dist = jnp.sqrt(dist_sq)
    mdist = jnp.maximum(margin - dist, 0.0)                   # clamp(min=0)
    loss = y * dist_sq + (1.0 - y) * (mdist * mdist)          # (block_b, 1)

    # Mask rows past the true batch size on the (possibly ragged) last tile.
    if batch % block_b != 0:
        row = jax.lax.broadcasted_iota(jnp.int32, loss.shape, 0) + i * block_b
        loss = jnp.where(row < batch, loss, 0.0)

    acc_ref[0] += jnp.sum(loss)

    @pl.when(i == pl.num_programs(0) - 1)
    def _finalize():
        out_ref[0, 0] = acc_ref[0] * inv_scale


def _pick_block_b(batch, dim, itemsize):
    """Pick a batch tile: whole batch if small, else ~2 MiB per input block."""
    target_bytes = 2 << 20  # conservative for v7x's smaller scoped VMEM
    if batch * dim * itemsize <= target_bytes:
        return batch
    tb = max(8, target_bytes // max(1, dim * itemsize))
    tb = max(8, (tb // 8) * 8)  # keep the (8, 128) sublane rule happy
    return int(min(batch, tb))


def contrastive_loss(x0, x1, y, margin=1.0, *, block_b=None):
    """Pallas implementation of ContrastiveLoss.forward(x0, x1, y)."""
    assert x0.ndim == 2 and x1.ndim == 2 and y.ndim == 1
    assert x0.shape == x1.shape
    assert x0.shape[0] == y.shape[0] and x0.shape[0] > 0
    B, D = x0.shape

    # y is tiny; reshape to (B, 1) so it rides along the batch tiling.
    y2 = y.astype(jnp.float32).reshape(B, 1)

    if block_b is None:
        block_b = _pick_block_b(B, D, jnp.dtype(x0.dtype).itemsize)
    block_b = int(min(block_b, B))
    if block_b < B:
        block_b = max(8, (block_b // 8) * 8)
    num_blocks = pl.cdiv(B, block_b)

    kernel = functools.partial(
        _contrastive_loss_kernel,
        margin=float(margin),
        inv_scale=1.0 / (2.0 * B),
        batch=B,
        block_b=block_b,
    )

    out = pl.pallas_call(
        kernel,
        out_shape=jax.ShapeDtypeStruct((1, 1), jnp.float32),
        grid=(num_blocks,),
        in_specs=[
            pl.BlockSpec((block_b, D), lambda i: (i, 0)),
            pl.BlockSpec((block_b, D), lambda i: (i, 0)),
            pl.BlockSpec((block_b, 1), lambda i: (i, 0)),
        ],
        # Scalar result: SMEM output avoids the masked (1,1) VMEM vector store
        # and its padded writeback tile.
        out_specs=pl.BlockSpec(memory_space=pltpu.MemorySpace.SMEM),
        scratch_shapes=[pltpu.SMEM((1,), jnp.float32)],
        compiler_params=pltpu.CompilerParams(
            dimension_semantics=("arbitrary",),
        ),
    )(x0, x1, y2)
    return out[0, 0]


def contrastive_loss_ref(x0, x1, y, margin=1.0):
    """Pure-JAX reference mirroring the PyTorch forward exactly."""
    x0 = x0.astype(jnp.float32)
    x1 = x1.astype(jnp.float32)
    y = y.astype(jnp.float32)
    diff = x0 - x1
    dist_sq = jnp.sum(diff * diff, axis=1)
    dist = jnp.sqrt(dist_sq)
    mdist = jnp.maximum(margin - dist, 0.0)
    loss = y * dist_sq + (1.0 - y) * mdist**2
    return jnp.sum(loss) / 2.0 / x0.shape[0]


if __name__ == "__main__":
    key = jax.random.PRNGKey(0)
    k0, k1, ky, k2, k3, k4 = jax.random.split(key, 6)

    # 1) Small f32 case (single-block path).
    B, D = 8, 32
    x0 = jax.random.normal(k0, (B, D), dtype=jnp.float32)
    x1 = jax.random.normal(k1, (B, D), dtype=jnp.float32)
    y = jax.random.bernoulli(ky, p=0.5, shape=(B,)).astype(jnp.float32)
    out = jax.block_until_ready(contrastive_loss(x0, x1, y, margin=1.0))
    ref = contrastive_loss_ref(x0, x1, y, margin=1.0)
    assert jnp.allclose(out, ref, rtol=1e-5, atol=1e-6), (out, ref)

    # 2) bf16 inputs: native dtype streamed in, upcast inside the kernel.
    x0b = x0.astype(jnp.bfloat16)
    x1b = x1.astype(jnp.bfloat16)
    out_b = jax.block_until_ready(contrastive_loss(x0b, x1b, y, margin=1.0))
    ref_b = contrastive_loss_ref(x0b, x1b, y, margin=1.0)
    assert jnp.allclose(out_b, ref_b, rtol=1e-4, atol=1e-5), (out_b, ref_b)

    # 3) Multi-block grid with a ragged last tile (accumulator + row mask).
    B2, D2 = 20, 32
    x0l = jax.random.normal(k2, (B2, D2), dtype=jnp.float32)
    x1l = jax.random.normal(k3, (B2, D2), dtype=jnp.float32)
    yl = jax.random.bernoulli(k4, p=0.5, shape=(B2,)).astype(jnp.float32)
    out_l = jax.block_until_ready(
        contrastive_loss(x0l, x1l, yl, margin=1.0, block_b=8))
    ref_l = contrastive_loss_ref(x0l, x1l, yl, margin=1.0)
    assert jnp.allclose(out_l, ref_l, rtol=1e-5, atol=1e-6), (out_l, ref_l)

    print("KERNEL_OK")
</pallas_src>

<mosaic_0001>
module attributes {stable_mosaic.version = 11 : i64} {
  func.func @_contrastive_loss_kernel(%arg0: i32, %arg1: memref<8x32xf32, #tpu.memory_space<vmem>>, %arg2: memref<8x32xf32, #tpu.memory_space<vmem>>, %arg3: memref<8x1xf32, #tpu.memory_space<vmem>>, %arg4: memref<1x1xf32, #tpu.memory_space<smem>>, %arg5: memref<1xf32, #tpu.memory_space<smem>>) attributes {dimension_semantics = [#tpu.dimension_semantics<arbitrary>], iteration_bounds = array<i64: 1>, scalar_prefetch = 0 : i64, scratch_operands = 1 : i64, tpu.core_type = #tpu.core_type<tc>, window_params = [{transform_indices = @transform_0, window_bounds = array<i64: 8, 32>}, {transform_indices = @transform_1, window_bounds = array<i64: 8, 32>}, {transform_indices = @transform_2, window_bounds = array<i64: 8, 1>}, {transform_indices = @transform_3, window_bounds = array<i64: 1, 1>}]} {
    %c0_i32 = arith.constant 0 : i32
    %0 = arith.cmpi eq, %arg0, %c0_i32 : i32
    %1 = arith.extui %0 : i1 to i32
    %c0_i32_0 = arith.constant 0 : i32
    %2 = arith.cmpi ne, %1, %c0_i32_0 : i32
    scf.if %2 {
      %cst_14 = arith.constant 0.000000e+00 : f32
      %c0_15 = arith.constant 0 : index
      %31 = memref.load %arg5[%c0_15] : memref<1xf32, #tpu.memory_space<smem>>
      memref.store %cst_14, %arg5[%c0_15] : memref<1xf32, #tpu.memory_space<smem>>
    } else {
    }
    %c0 = arith.constant 0 : index
    %c0_1 = arith.constant 0 : index
    %3 = vector.load %arg1[%c0, %c0_1] : memref<8x32xf32, #tpu.memory_space<vmem>>, vector<8x32xf32>
    %c0_2 = arith.constant 0 : index
    %c0_3 = arith.constant 0 : index
    %4 = vector.load %arg2[%c0_2, %c0_3] : memref<8x32xf32, #tpu.memory_space<vmem>>, vector<8x32xf32>
    %c0_4 = arith.constant 0 : index
    %c0_5 = arith.constant 0 : index
    %5 = vector.load %arg3[%c0_4, %c0_5] : memref<8x1xf32, #tpu.memory_space<vmem>>, vector<8x1xf32>
    %6 = arith.subf %3, %4 : vector<8x32xf32>
    %7 = arith.mulf %6, %6 : vector<8x32xf32>
    %cst = arith.constant dense<0.000000e+00> : vector<8xf32>
    %8 = vector.multi_reduction <add>, %7, %cst [1] : vector<8x32xf32> to vector<8xf32>
    %9 = vector.shape_cast %8 : vector<8xf32> to vector<8x1xf32>
    %10 = math.sqrt %9 : vector<8x1xf32>
    %cst_6 = arith.constant 1.000000e+00 : f32
    %11 = vector.broadcast %cst_6 : f32 to vector<8x1xf32>
    %12 = arith.subf %11, %10 : vector<8x1xf32>
    %cst_7 = arith.constant 0.000000e+00 : f32
    %13 = vector.broadcast %cst_7 : f32 to vector<8x1xf32>
    %14 = arith.maximumf %12, %13 : vector<8x1xf32>
    %15 = arith.mulf %5, %9 : vector<8x1xf32>
    %cst_8 = arith.constant 1.000000e+00 : f32
    %16 = vector.broadcast %cst_8 : f32 to vector<8x1xf32>
    %17 = arith.subf %16, %5 : vector<8x1xf32>
    %18 = arith.mulf %14, %14 : vector<8x1xf32>
    %19 = arith.mulf %17, %18 : vector<8x1xf32>
    %20 = arith.addf %15, %19 : vector<8x1xf32>
    %c0_9 = arith.constant 0 : index
    %21 = memref.load %arg5[%c0_9] : memref<1xf32, #tpu.memory_space<smem>>
    %22 = vector.shape_cast %20 : vector<8x1xf32> to vector<1x8x1xf32>
    %cst_10 = arith.constant dense<0.000000e+00> : vector<1xf32>
    %23 = vector.multi_reduction <add>, %22, %cst_10 [1, 2] : vector<1x8x1xf32> to vector<1xf32>
    %24 = vector.shape_cast %23 : vector<1xf32> to vector<1x1x1xf32>
    %25 = vector.extract %24[0, 0, 0] : f32 from vector<1x1x1xf32>
    %26 = arith.addf %21, %25 : f32
    %c0_11 = arith.constant 0 : index
    %27 = memref.load %arg5[%c0_11] : memref<1xf32, #tpu.memory_space<smem>>
    memref.store %26, %arg5[%c0_11] : memref<1xf32, #tpu.memory_space<smem>>
    %c0_i32_12 = arith.constant 0 : i32
    %28 = arith.cmpi eq, %arg0, %c0_i32_12 : i32
    %29 = arith.extui %28 : i1 to i32
    %c0_i32_13 = arith.constant 0 : i32
    %30 = arith.cmpi ne, %29, %c0_i32_13 : i32
    scf.if %30 {
      %c0_14 = arith.constant 0 : index
      %31 = memref.load %arg5[%c0_14] : memref<1xf32, #tpu.memory_space<smem>>
      %cst_15 = arith.constant 6.250000e-02 : f32
      %32 = arith.mulf %31, %cst_15 : f32
      %c0_16 = arith.constant 0 : index
      %c0_17 = arith.constant 0 : index
      %33 = memref.load %arg4[%c0_16, %c0_17] : memref<1x1xf32, #tpu.memory_space<smem>>
      memref.store %32, %arg4[%c0_16, %c0_17] : memref<1x1xf32, #tpu.memory_space<smem>>
    } else {
    }
    return
  }
  func.func @transform_0(%arg0: i32) -> (i32, i32) {
    %c0_i32 = arith.constant 0 : i32
    %c0_i32_0 = arith.constant 0 : i32
    return %arg0, %c0_i32 : i32, i32
  }
  func.func @transform_1(%arg0: i32) -> (i32, i32) {
    %c0_i32 = arith.constant 0 : i32
    %c0_i32_0 = arith.constant 0 : i32
    return %arg0, %c0_i32 : i32, i32
  }
  func.func @transform_2(%arg0: i32) -> (i32, i32) {
    %c0_i32 = arith.constant 0 : i32
    %c0_i32_0 = arith.constant 0 : i32
    return %arg0, %c0_i32 : i32, i32
  }
  func.func @transform_3(%arg0: i32) -> (i32, i32) {
    %c0_i32 = arith.constant 0 : i32
    %c0_i32_0 = arith.constant 0 : i32
    %c0_i32_1 = arith.constant 0 : i32
    return %c0_i32, %c0_i32_0 : i32, i32
  }
}

</mosaic_0001>

<bundles_post_ra>
// kernel: tpu_custom_call.1
= control target key start
LH: loop header
LB: loop body
LE: loop exit
PB: predicated region body
PF: predicated region fallthrough
CT: control target
= control target key end

     0   :  { %8 = vsyncpa [#allocation4], 0  ;;  %s181_s0 = inlined_call_operand.vmem [shape: f32[8,32], index: 0, kind: input, shape index: {}]   ;;  %s182_s1 = inlined_call_operand.hbm [shape: f32[8,32], index: 1, kind: input, shape index: {}]   ;;  %s183_s2 = inlined_call_operand.vmem [shape: f32[8,1], index: 2, kind: input, shape index: {}]   ;;  %s184_s3 = inlined_call_operand.hbm [shape: f32[1,1], index: 3, kind: output, shape index: {}]  }
   0x1   :  { %9 = vsyncpa [#allocation5], 0  ;;  %s17_s14 = sshll.u32 %s182_s1, 4  ;;  %s147_s15 = smov [#allocation3]   ;;  %s18_s14 = int_to_ptr.hbm [resolvable:$true] %s17_s14 }
   0x2   :  { %s19_s16 = sshll.u32 %s147_s15, 4  ;;  %s20_s16 = int_to_ptr.vmem [resolvable:$true] %s19_s16 }
   0x3   :  { %22 = dma.hbm_to_vmem [thread:$0]  %s18_s14, 128, %s20_s16, [#allocation4]  }
   0x4   :  { %143 = dma.done.wait [#allocation4], 128  }
   0x5   :  { %144 = vsyncadd [#allocation4], 4294967168  ;;  %v35_v0 = vld [vmem:[%s181_s0] sm:$0xff]  ;;  %vm40_vm0 = vcmask 261120   ;;  %vm64_vm3 = vcmask 7168   ;;  %s148_s23 = smov [#allocation6]  }
   0x6   :  { %v36_v1 = vld [vmem:[#allocation3] sm:$0xff] }
   0x7   :  { %v38_v2 = vsub.f32 %v35_v0, %v36_v1  ;;  %v37_v17 = vld [vmem:[%s183_s2] sm:$0xff]  ;;  %s90_s2 = sshll.u32 %s184_s3, 4  ;;  %s91_s2 = int_to_ptr.hbm [resolvable:$true] %s90_s2 }
   0x8   :  { %v59_v19 = vsub.f32 1.0, %v37_v17 }
   0x9   :  { %v39_v3 = vmul.f32 %v38_v2, %v38_v2 }
   0xb   :  { %v41_v4 = vsel %vm40_vm0, %v39_v3, 0.0 }
   0xc   :  { %42 = vadd.xlane.f32.xlu0 %v41_v4 }
  0x7f   :  { %v43_v5 = vpop.xlane.xlu0 %42 }
  0x80   :  { %105 = vrsqrt.f32 %v43_v5  ;;  %vm51_vm1 = vcmp.eq.f32.partialorder %v43_v5, inf  ;;  %v54_v13 = vand.u32 2147483648, %v43_v5  ;;  %vm53_vm2 = vcmp.eq.f32.partialorder %v43_v5, 0.0 }
  0x81   :  { %v58_v21 = vmul.f32 %v43_v5, %v37_v17 }
  0x86   :  { %v106_v6 = vpop.eup %105 }
  0x87   :  { %v45_v7 = vmul.f32 %v106_v6, %v43_v5 }
  0x89   :  { %v46_v8 = vmul.f32 %v106_v6, %v45_v7 }
  0x8b   :  { %v47_v9 = vmul.f32 0.5, %v46_v8 }
  0x8d   :  { %v48_v10 = vsub.f32 1.5, %v47_v9 }
  0x8f   :  { %v49_v11 = vmul.f32 %v106_v6, %v48_v10 }
  0x91   :  { %v50_v12 = vmul.f32 %v49_v11, %v43_v5 }
  0x93   :  { %v52_v14 = vsel %vm51_vm1, %v43_v5, %v50_v12 }
  0x94   :  { %v55_v15 = vsel %vm53_vm2, %v54_v13, %v52_v14 }
  0x95   :  { %v56_v16 = vsub.f32 1.0, %v55_v15 }
  0x97   :  { %v57_v18 = vmax.f32 %v56_v16, 0.0 }
  0x99   :  { %v60_v20 = vmul.f32 %v57_v18, %v57_v18 }
  0x9b   :  { %v61_v22 = vmul.f32 %v60_v20, %v59_v19 }
  0x9d   :  { %v62_v23 = vadd.f32 %v61_v22, %v58_v21 }
  0x9f   :  { %v65_v24 = vsel %vm64_vm3, %v62_v23, 0.0 }
  0xa0   :  { %66 = vadd.xlane.f32.xlu0 %v65_v24 }
 0x113   :  { %v67_v25 = vpop.xlane.xlu0 %66 }
 0x114   :  { %v68_v26 = vrot.slane %v67_v25, 4 }
 0x116   :  { %v69_v27 = vadd.f32 %v68_v26, %v67_v25 }
 0x118   :  { %v70_v28 = vrot.slane %v69_v27, 2 }
 0x11a   :  { %v71_v29 = vadd.f32 %v70_v28, %v69_v27 }
 0x11c   :  { %v72_v30 = vrot.slane %v71_v29, 1 }
 0x11e   :  { %v73_v31 = vadd.f32 %v72_v30, %v71_v29 }
 0x120   :  { %101 = vpush %v73_v31 }
 0x151   :  { %s102_s21 = spop %101 }
 0x152   :  { %s82_s22 = smul.f32 0.0625, %s102_s21 }
 0x154   :  { %84 = sst [smem:[#allocation6]] %s82_s22 }
 0x155   :  { %93 = dma.smem_to_hbm %s148_s23, 16, %s91_s2, [#allocation5]  }
 0x156   :  { %145 = dma.done.wait [#allocation5], 16  }
 0x157   :  { %146 = vsyncadd [#allocation5], 4294967280 }
 0x158   :  { %98 = sfence }
 0x159   :  { %99 = vsyncpa [#allocation4], 1 }
 0x15a   :  { %100 = vsyncpa [#allocation5], 1 }

</bundles_post_ra>
